<compile_context>
chip_gen: v6e
topology: v6e:2x2x1
jax: 0.10.0
libtpu: 0.0.40
codegen_flags: <defaults>
</compile_context>

<pallas_src>
import math

import jax
import jax.numpy as jnp
from jax.experimental import pallas as pl
from jax.experimental.pallas import tpu as pltpu


def _copy_kernel(x_ref, o_ref):
    # Pure lane-dense copy of one (TB, TF) tile. No reshape, no relayout.
    o_ref[...] = x_ref[...]


def _vmem_budget():
    """Return (per-buffer block byte budget, explicit scoped-VMEM limit)."""
    try:
        cap = int(pltpu.get_tpu_info().vmem_capacity_bytes)
    except Exception:
        cap = 64 * 1024 * 1024  # conservative default (v7x per-TC VMEM)
    if cap >= 128 * 1024 * 1024:
        # v5e / v6e: 128 MiB physical VMEM -> bigger blocks, explicit 48 MiB limit
        return 8 * 1024 * 1024, 48 * 1024 * 1024
    # v7x (64 MiB per TC) or unknown: smaller blocks, 40 MiB limit
    return 6 * 1024 * 1024, 40 * 1024 * 1024


def _largest_lane_dense_divisor(total: int, itemsize: int) -> int:
    """Largest multiple of 128 dividing `total`, capped at ~2 MiB of row width."""
    cap = min(total, max(128, (2 * 1024 * 1024) // itemsize))
    best = 0
    c = 128
    while c <= cap:
        if total % c == 0:
            best = c
        c += 128
    return best


def flatten(x: jax.Array) -> jax.Array:
    """Pallas equivalent of torch `input.view(input.size(0), -1)`."""
    B = x.shape[0]
    flat = math.prod(x.shape[1:]) if x.ndim > 1 else 1
    total = B * flat
    itemsize = jnp.dtype(x.dtype).itemsize

    if total == 0:
        # Degenerate empty tensor: pure metadata reshape, nothing to copy.
        return x.reshape(B, flat)

    # ---- choose the 2-D view the copy kernel sees (all reshapes are free) ---
    if (flat < 128 or flat % 128 != 0) and total % 128 == 0:
        # Narrow / lane-unfriendly flat dim: re-factor to a lane-dense slab.
        C = _largest_lane_dense_divisor(total, itemsize)
        R = total // C
    else:
        R, C = B, flat
    view = x.reshape(R, C)  # metadata-only

    # ---- block sizing --------------------------------------------------------
    block_budget, vmem_limit = _vmem_budget()
    total_bytes = total * itemsize
    # Guarantee >= ~8 grid steps on large tensors so in/out DMAs pipeline and
    # the v7x megacore has work to split; floor at 512 KiB per block.
    block_budget = min(block_budget, max(512 * 1024, total_bytes // 8))

    # Batch tile: full R, or a multiple of the packed-sublane count.
    sub = max(8, 32 // itemsize)  # 8 f32 / 16 bf16 / 32 int8-fp8
    rows_budget = max(1, block_budget // max(1, C * itemsize))
    if R <= max(sub, rows_budget):
        TB = R  # full-dim rule
    else:
        TB = max(sub, (rows_budget // sub) * sub)

    # Flat tile: full C, or a multiple of 128 (unmasked full-width stores).
    tf_budget = max(128, block_budget // max(1, TB * itemsize))
    if C <= tf_budget:
        TF = C  # full-dim rule
    else:
        TF = (tf_budget // 128) * 128

    grid = (pl.cdiv(R, TB), pl.cdiv(C, TF))

    out2 = pl.pallas_call(
        _copy_kernel,
        out_shape=jax.ShapeDtypeStruct((R, C), x.dtype),
        grid_spec=pltpu.PrefetchScalarGridSpec(
            num_scalar_prefetch=0,
            grid=grid,
            in_specs=[pl.BlockSpec((TB, TF), lambda i, j: (i, j))],
            out_specs=pl.BlockSpec((TB, TF), lambda i, j: (i, j)),
        ),
        compiler_params=pltpu.CompilerParams(
            dimension_semantics=("parallel", "parallel"),
            vmem_limit_bytes=vmem_limit,
        ),
    )(view)

    # Metadata-only reshape back to the Flatten output shape.
    return out2.reshape(B, flat)


if __name__ == "__main__":
    key = jax.random.PRNGKey(0)

    # Primary input consistent with the module (NCHW -> (B, C*H*W)).
    x = jax.random.normal(key, (2, 4, 16, 16), dtype=jnp.float32)
    out = jax.block_until_ready(flatten(x))
    ref = x.reshape(x.shape[0], -1)
    assert out.shape == (2, 4 * 16 * 16), out.shape
    assert out.dtype == x.dtype
    assert bool(jnp.array_equal(out, ref))

    # Narrow-flat case: flat=48 (<128), total divisible by 128 -> lane-dense refactor path.
    k1, k2 = jax.random.split(key)
    y = jax.random.normal(k1, (8, 3, 4, 4), dtype=jnp.float32)
    out_y = jax.block_until_ready(flatten(y))
    assert bool(jnp.array_equal(out_y, y.reshape(8, -1)))

    # Non-refactorable fallback: flat=105, total=210 not a multiple of 128.
    z = jax.random.normal(k2, (2, 3, 5, 7), dtype=jnp.float32)
    out_z = jax.block_until_ready(flatten(z))
    assert bool(jnp.array_equal(out_z, z.reshape(2, -1)))

    print("KERNEL_OK")
</pallas_src>

<mosaic_0001>
module attributes {stable_mosaic.version = 11 : i64} {
  func.func @_copy_kernel(%arg0: i32, %arg1: i32, %arg2: memref<2x1024xf32, #tpu.memory_space<vmem>>, %arg3: memref<2x1024xf32, #tpu.memory_space<vmem>>) attributes {dimension_semantics = [#tpu.dimension_semantics<parallel>, #tpu.dimension_semantics<parallel>], iteration_bounds = array<i64: 1, 1>, scalar_prefetch = 0 : i64, scratch_operands = 0 : i64, tpu.core_type = #tpu.core_type<tc>, window_params = [{transform_indices = @transform_0, window_bounds = array<i64: 2, 1024>}, {transform_indices = @transform_1, window_bounds = array<i64: 2, 1024>}]} {
    %c0 = arith.constant 0 : index
    %c0_0 = arith.constant 0 : index
    %0 = vector.load %arg2[%c0, %c0_0] : memref<2x1024xf32, #tpu.memory_space<vmem>>, vector<2x1024xf32>
    %c0_1 = arith.constant 0 : index
    %c0_2 = arith.constant 0 : index
    %1 = vector.load %arg3[%c0_1, %c0_2] : memref<2x1024xf32, #tpu.memory_space<vmem>>, vector<2x1024xf32>
    tpu.vector_store %arg3[%c0_1, %c0_2], %0 {strides = array<i32>} : memref<2x1024xf32, #tpu.memory_space<vmem>>, vector<2x1024xf32>,
    return
  }
  func.func @transform_0(%arg0: i32, %arg1: i32) -> (i32, i32) {
    %c0_i32 = arith.constant 0 : i32
    return %arg0, %arg1 : i32, i32
  }
  func.func @transform_1(%arg0: i32, %arg1: i32) -> (i32, i32) {
    %c0_i32 = arith.constant 0 : i32
    return %arg0, %arg1 : i32, i32
  }
}

</mosaic_0001>

<bundles_post_ra>
// kernel: tpu_custom_call.1
= control target key start
LH: loop header
LB: loop body
LE: loop exit
PB: predicated region body
PF: predicated region fallthrough
CT: control target
= control target key end

     0   :  { %6 = vsyncpa [#allocation3], 0  ;;  %s104_s0 = inlined_call_operand.hbm [shape: f32[2,1024], index: 0, kind: input, shape index: {}]   ;;  %s105_s1 = inlined_call_operand.hbm [shape: f32[2,1024], index: 1, kind: output, shape index: {}]  }
   0x1   :  { %7 = vsyncpa [#allocation4], 0  ;;  %s86_s6 = smov [#allocation2]  }
   0x2   :  { %s14_s7 = sshll.u32 %s86_s6, 4  ;;  %s15_s7 = int_to_ptr.vmem [resolvable:$true] %s14_s7 }
   0x3   :  { %s50_s8 = scalar_lea.vmem %s15_s7, 256  ;;  %p55_p1 = scmp.lt.s32.totalorder %s15_s7, %s15_s7 }
   0x4   :  { %p51_p0 = scmp.ne.s32.totalorder %s15_s7, %s50_s8  ;;  %p56_p2 = scmp.lt.s32.totalorder %s50_s8, %s50_s8 }
   0x6   :  { %p57_p3 = por %p56_p2, %p55_p1 }
   0x8   :  { %p58_p4 = pnand %p57_p3, %p51_p0 }
   0xa   :  { %61 = shalt.err (!%p58_p4)
}
   0xb   :  { %17 = dma.hbm_to_vmem [thread:$0]  %s104_s0, 256, %s15_s7, [#allocation3]  }
   0xc   :  { %82 = dma.done.wait [#allocation3], 256  }
   0xd   :  { %83 = vsyncadd [#allocation3], 4294967040  ;;  %s87_s11 = smov [#allocation5]   ;;  %v21_v0 = vld [vmem:[#allocation2] sm:$0xff]  ;;  %v22_v1 = vld [vmem:[#allocation2 + $0x8] sm:$0xff] }
   0xe   :  { %s31_s12 = sshll.u32 %s87_s11, 4  ;;  %23 = vst [vmem:[#allocation5] sm:$0xff] %v21_v0  ;;  %24 = vst [vmem:[#allocation5 + $0x8] sm:$0xff] %v22_v1  ;;  %s32_s12 = int_to_ptr.vmem [resolvable:$true] %s31_s12 }
   0xf   :  { %s62_s13 = scalar_lea.vmem %s32_s12, 256  ;;  %p67_p6 = scmp.lt.s32.totalorder %s32_s12, %s32_s12 }
  0x10   :  { %p63_p5 = scmp.ne.s32.totalorder %s32_s12, %s62_s13  ;;  %p68_p7 = scmp.lt.s32.totalorder %s62_s13, %s62_s13 }
  0x12   :  { %p69_p8 = por %p68_p7, %p67_p6 }
  0x14   :  { %p70_p9 = pnand %p69_p8, %p63_p5 }
  0x16   :  { %73 = shalt.err (!%p70_p9)
}
  0x17   :  { %34 = dma.vmem_to_hbm [thread:$0]  %s32_s12, 256, %s105_s1, [#allocation4]  }
  0x18   :  { %84 = dma.done.wait [#allocation4], 256  }
  0x19   :  { %85 = vsyncadd [#allocation4], 4294967040 }
  0x1a   :  { %38 = vsyncpa [#allocation3], 1 }
  0x1b   :  { %39 = vsyncpa [#allocation4], 1 }

</bundles_post_ra>
